<compile_context>
chip_gen: v6e
topology: v6e:2x2x1
jax: 0.10.0
libtpu: 0.0.40
codegen_flags: <defaults>
</compile_context>

<pallas_src>
import math

import jax
import jax.numpy as jnp
import numpy as np
from jax import lax
from jax.experimental import pallas as pl
from jax.experimental.pallas import tpu as pltpu
from jax.scipy.special import erf as jax_erf

# ---- constants matching the PyTorch module defaults ----
BOHR = 0.5291772105638411
HARTREE = 27.211386024367243
G_A, G_C = 3.0, 2.0
K2 = 4.0 / 3.0
K4, K5, K6 = 4.10451, 19.08857, 254.5553148552
KN, WF = 7.5, 6.0
CONVERT2BOHR = 1.0 / BOHR
CONVERT2EV = 0.5 * HARTREE
CONVERT2A3 = BOHR ** 3
CONVERT2EVA6 = HARTREE * BOHR ** 6
SQRT3 = math.sqrt(3.0)


def softplus_inverse(x: float) -> float:
    return math.log(math.expm1(x))


def _round_up(x: int, m: int) -> int:
    return ((x + m - 1) // m) * m


def _erf(x):
    # Abramowitz & Stegun 7.1.26 polynomial approximation (|error| < 1.5e-7); avoids
    # relying on a native erf lowering inside Mosaic.  Exact divide kept on purpose
    # (covcn feeds an amplifying Gaussian, so this path is accuracy-sensitive).
    ax = jnp.abs(x)
    t = 1.0 / (1.0 + 0.3275911 * ax)
    poly = t * (0.254829592 + t * (-0.284496736 + t * (1.421413741
               + t * (-1.453152027 + t * 1.061405429))))
    y = 1.0 - poly * jnp.exp(-ax * ax)
    return jnp.where(x >= 0.0, y, -y)


# ----------------------------- kernel 1: covcn scatter -----------------------------
def covcn_kernel(pairpack_ref, idxicol_ref, covcn_ref):
    f32 = jnp.float32
    TP = pairpack_ref.shape[1]
    Np = covcn_ref.shape[1]

    @pl.when(pl.program_id(0) == 0)
    def _():
        covcn_ref[...] = jnp.zeros_like(covcn_ref)

    rij = pairpack_ref[0:1, :] * CONVERT2BOHR                     # [1, TP]  (Bohr)
    rco = K2 * (pairpack_ref[1:2, :] + pairpack_ref[2:3, :])
    d = jnp.abs(pairpack_ref[3:4, :] - pairpack_ref[4:5, :]) + K5
    den = K4 * jnp.exp(-(d * d) / K6)
    tmp = den * 0.5 * (1.0 + _erf(-KN * (rij - rco) / rco))       # [1, TP]
    # TODO(synk): cutoff switch_function branch not implemented (module default cutoff=None).

    # index_add_(0, idx_i, tmp) as a one-hot matmul; padded pairs carry idx = -1 -> no match.
    oh_scatter = (lax.broadcasted_iota(jnp.int32, (TP, Np), 1)
                  == idxicol_ref[...]).astype(f32)                # [TP, Np]
    covcn_ref[...] = covcn_ref[...] + jnp.dot(
        tmp, oh_scatter, precision=lax.Precision.HIGHEST,
        preferred_element_type=f32)


# --------------------- kernel 2: zeta (once) + pairwise dispersion ---------------------
def disp_kernel(params_ref,
                pairpack_ref, idxrows_ref, idxicol_ref, refc6ijT_ref,
                covcn_ref, atompackT_ref, cnT_ref, ncmaskT_ref, ncwT_ref,
                refqT_ref, fixgwT_ref, alpha0T_ref, refc6iiT_ref,
                expAT_ref, expBT_ref, reduceT_ref,
                atomout_ref, zetaT_sc):
    f32 = jnp.float32
    TP = pairpack_ref.shape[1]
    Np = covcn_ref.shape[1]

    s6 = params_ref[0]
    s8 = params_ref[1]
    a1 = params_ref[2]
    a2 = params_ref[3]
    scaleq = params_ref[4]

    shard = pl.program_id(0)
    t = pl.program_id(1)

    @pl.when(t == 0)
    def _():
        # ---- per-atom phase: gaussian weights, zeta, atomic pol / C6 (runs once per shard) ----
        covcn = covcn_ref[...]                                    # [1, Np]
        diff = covcn - cnT_ref[...]                               # [RC, Np]
        e = ncmaskT_ref[...] * jnp.exp(-WF * ncwT_ref[...] * diff * diff)
        gw = jnp.dot(reduceT_ref[...], e, preferred_element_type=f32)   # [8, Np] (row 7 = 0)
        norm = jnp.sum(gw, axis=0, keepdims=True)                 # [1, Np]
        norm_ = jnp.where(norm > 1e-8, norm, 1.0)
        gw = jnp.where(norm > 1e-8, gw / norm_, fixgwT_ref[...])

        zeff = atompackT_ref[0:1, :]
        gam = atompackT_ref[1:2, :]
        qa = atompackT_ref[2:3, :]
        qref = zeff + refqT_ref[...] * scaleq                     # [8, Np]
        qmod = zeff + qa                                          # [1, Np]
        qmod_ = jnp.where(qmod > 1e-8, qmod, 1.0)
        zeta_core = jnp.where(
            qmod > 1e-8,
            jnp.exp(G_A * (1.0 - jnp.exp(gam * G_C * (1.0 - qref / qmod_)))),
            math.exp(G_A))
        zeta = zeta_core * gw                                     # [8, Np] (row 7 = 0)
        zetaT_sc[...] = zeta

        pol = jnp.sum(zeta * alpha0T_ref[...], axis=0, keepdims=True) * CONVERT2A3
        zA = jnp.dot(expAT_ref[...], zeta, preferred_element_type=f32)   # [RR, Np]
        zB = jnp.dot(expBT_ref[...], zeta, preferred_element_type=f32)
        c6a = jnp.sum(refc6iiT_ref[...] * zA * zB, axis=0, keepdims=True) * CONVERT2EVA6

        first = (shard == 0).astype(f32)     # only shard 0 contributes pol / C6 (avoid double count)
        zrow = jnp.zeros_like(pol)
        atomout_ref[...] = jnp.concatenate(
            [zrow, pol * first, c6a * first, zrow, zrow, zrow, zrow, zrow], axis=0)

    # ---- per pair-tile phase: gather zeta, C6ij, dispersion energy ----
    idx_cat = jnp.concatenate([idxrows_ref[0:1, :], idxrows_ref[1:2, :]], axis=1)   # [1, 2TP]
    oh_gather = (lax.broadcasted_iota(jnp.int32, (Np, 2 * TP), 0)
                 == idx_cat).astype(f32)                          # [Np, 2TP]
    gathered = jnp.dot(zetaT_sc[...], oh_gather, preferred_element_type=f32)        # [8, 2TP]
    zetaiT = gathered[:, :TP]
    zetajT = gathered[:, TP:]
    ziexp = jnp.dot(expAT_ref[...], zetaiT, preferred_element_type=f32)             # [RR, TP]
    zjexp = jnp.dot(expBT_ref[...], zetajT, preferred_element_type=f32)             # [RR, TP]
    c6ij = jnp.sum(refc6ijT_ref[...].astype(f32) * ziexp * zjexp,
                   axis=0, keepdims=True)                         # [1, TP]

    rij = pairpack_ref[0:1, :] * CONVERT2BOHR
    sqrt_r4r2ij = SQRT3 * pairpack_ref[5:6, :] * pairpack_ref[6:7, :]
    r0 = a1 * sqrt_r4r2ij + a2
    rij2 = rij * rij
    rij6 = rij2 * rij2 * rij2
    rij8 = rij6 * rij2
    r02 = r0 * r0
    r06 = r02 * r02 * r02
    r08 = r06 * r02
    oor6 = pl.reciprocal(rij6 + r06, approx=True)
    oor8 = pl.reciprocal(rij8 + r08, approx=True)
    pairwise = -c6ij * (s6 * oor6 + s8 * sqrt_r4r2ij * sqrt_r4r2ij * oor8) * CONVERT2EV

    # scatter-add into edisp (row 0 of the resident per-shard output block)
    oh_scatter = (lax.broadcasted_iota(jnp.int32, (TP, Np), 1)
                  == idxicol_ref[...]).astype(f32)                # [TP, Np]
    contrib = jnp.dot(pairwise, oh_scatter,
                      precision=lax.Precision.HIGHEST,
                      preferred_element_type=f32)                 # [1, Np]
    atomout_ref[0:1, :] = atomout_ref[0:1, :] + contrib


# ----------------------------- wrapper (glue) -----------------------------
def d4_dispersion_forward(N, Z, qa, rij, idx_i, idx_j, bufs, refc6, params,
                          compute_atomic_quantities=True,
                          pair_tile=512, num_shards=2):
    """params = softplus-activated [s6, s8, a1, a2, scaleq] (f32[5])."""
    f32, i32 = jnp.float32, jnp.int32
    P = int(rij.shape[0])
    N = int(N)
    if N == 0:
        z = jnp.zeros((0,), f32)
        return z, z, z
    if P == 0:
        z = jnp.zeros((N,), f32)
        return z, z, z

    R = int(refc6.shape[-1])
    C = int(bufs["cn"].shape[-1])
    RR, RC = R * R, R * C

    TP = int(pair_tile)
    S = max(1, int(num_shards))
    T_total = -(-P // TP)
    TPS = -(-T_total // S)            # pair tiles per shard
    Ppad = S * TPS * TP
    Np = _round_up(max(N, 1), 128)    # lane-dense atom axis
    pad_p = Ppad - P
    pad_n = Np - N

    # ---- per-pair packed inputs (pairs on lanes); padded pairs: benign values, idx = -1 ----
    Zi, Zj = Z[idx_i], Z[idx_j]
    padf = lambda v, c: jnp.pad(v.astype(f32), (0, pad_p), constant_values=c)
    padi = lambda v, c: jnp.pad(v.astype(i32), (0, pad_p), constant_values=c)

    pairpack = jnp.stack([
        padf(rij, 1.0),
        padf(bufs["rcov"][Zi], 1.0), padf(bufs["rcov"][Zj], 1.0),
        padf(bufs["en"][Zi], 1.0), padf(bufs["en"][Zj], 1.0),
        padf(bufs["sqrt_r4r2"][Zi], 1.0), padf(bufs["sqrt_r4r2"][Zj], 1.0),
        jnp.zeros((Ppad,), f32)], axis=0)                         # [8, Ppad]

    idx_i_p = padi(idx_i, -1)
    idx_j_p = padi(idx_j, -1)
    neg = jnp.full((Ppad,), -1, i32)
    idxrows = jnp.stack([idx_i_p, idx_j_p, neg, neg, neg, neg, neg, neg], axis=0)   # [8, Ppad]
    idxicol = idx_i_p[:, None]                                    # [Ppad, 1]

    # TODO(synk): the per-pair refc6[Zi, Zj] gather stays in JAX glue (data-dependent in-kernel
    # DMA gather over the [Zmax^2, R*R] table not implemented); stream it lane-dense in bf16.
    refc6ij = refc6[Zi, Zj].reshape(P, RR).astype(f32)
    refc6ijT = jnp.pad(refc6ij, ((0, pad_p), (0, 0))).T.astype(jnp.bfloat16)        # [RR, Ppad]

    # ---- per-atom transposed tables (atoms on lanes); padded atoms use Z = 0 (benign) ----
    Zp = jnp.pad(Z.astype(i32), (0, pad_n))
    qap = jnp.pad(qa.astype(f32), (0, pad_n))
    zrow = jnp.zeros((Np,), f32)
    atompackT = jnp.stack([bufs["zeff"][Zp].astype(f32), bufs["gam"][Zp].astype(f32),
                           qap, zrow, zrow, zrow, zrow, zrow], axis=0)              # [8, Np]
    cnT = bufs["cn"][Zp].reshape(Np, RC).T.astype(f32)            # [RC, Np]
    ncmaskT = bufs["ncount_mask"][Zp].reshape(Np, RC).T.astype(f32)
    ncwT = bufs["ncount_weight"][Zp].reshape(Np, RC).T.astype(f32)

    pad_r = lambda m: jnp.pad(m.T.astype(f32), ((0, 8 - R), (0, 0)))                # [8, Np]
    refqT = pad_r(bufs["refq"][Zp])
    fixgwT = pad_r(bufs["fixgweights"][Zp])
    alpha0T = pad_r(bufs["alpha"][Zp, :, 0])
    refc6iiT = refc6[Zp, Zp].reshape(Np, RR).T.astype(f32)        # [RR, Np]

    # constant 0/1 matrices: (r,s) expansion and ncount group-sum (8th column/row is zero)
    rr_idx = jnp.arange(RR)
    cols8 = jnp.arange(8)
    expAT = (rr_idx[:, None] // R == cols8[None, :]).astype(f32)  # [RR, 8]
    expBT = (rr_idx[:, None] % R == cols8[None, :]).astype(f32)   # [RR, 8]
    reduceT = (cols8[:, None] == (jnp.arange(RC)[None, :] // C)).astype(f32)        # [8, RC]

    params8 = jnp.pad(params.astype(f32), (0, 8 - int(params.shape[0])))

    vmem_limit = 48 * 1024 * 1024   # budgeted against v7x's 64 MiB VMEM (headroom left)

    # ---------------- kernel 1: coordination numbers ----------------
    covcn = pl.pallas_call(
        covcn_kernel,
        out_shape=jax.ShapeDtypeStruct((1, Np), f32),
        grid_spec=pltpu.PrefetchScalarGridSpec(
            num_scalar_prefetch=0,
            grid=(S * TPS,),
            in_specs=[pl.BlockSpec((8, TP), lambda t: (0, t)),
                      pl.BlockSpec((TP, 1), lambda t: (t, 0))],
            out_specs=pl.BlockSpec((1, Np), lambda t: (0, 0))),
        compiler_params=pltpu.CompilerParams(
            dimension_semantics=("arbitrary",),
            vmem_limit_bytes=vmem_limit),
    )(pairpack, idxicol)

    # ---------------- kernel 2: zeta + dispersion energy ----------------
    pair_map = lambda s, t, prm: (0, s * TPS + t)
    pairc_map = lambda s, t, prm: (s * TPS + t, 0)
    atom_map = lambda s, t, prm: (0, 0)

    atomout = pl.pallas_call(
        disp_kernel,
        out_shape=jax.ShapeDtypeStruct((S * 8, Np), f32),
        grid_spec=pltpu.PrefetchScalarGridSpec(
            num_scalar_prefetch=1,
            grid=(S, TPS),
            in_specs=[pl.BlockSpec((8, TP), pair_map),       # pairpack
                      pl.BlockSpec((8, TP), pair_map),       # idxrows
                      pl.BlockSpec((TP, 1), pairc_map),      # idx_i column
                      pl.BlockSpec((RR, TP), pair_map),      # refc6ij (bf16, transposed)
                      pl.BlockSpec((1, Np), atom_map),       # covcn
                      pl.BlockSpec((8, Np), atom_map),       # zeff / gam / qa
                      pl.BlockSpec((RC, Np), atom_map),      # cn
                      pl.BlockSpec((RC, Np), atom_map),      # ncount_mask
                      pl.BlockSpec((RC, Np), atom_map),      # ncount_weight
                      pl.BlockSpec((8, Np), atom_map),       # refq
                      pl.BlockSpec((8, Np), atom_map),       # fixgweights
                      pl.BlockSpec((8, Np), atom_map),       # alpha0
                      pl.BlockSpec((RR, Np), atom_map),      # refc6ii
                      pl.BlockSpec((RR, 8), atom_map),       # expA^T
                      pl.BlockSpec((RR, 8), atom_map),       # expB^T
                      pl.BlockSpec((8, RC), atom_map)],      # ncount group-sum
            out_specs=pl.BlockSpec((8, Np), lambda s, t, prm: (s, 0)),
            scratch_shapes=[pltpu.VMEM((8, Np), f32)]),
        compiler_params=pltpu.CompilerParams(
            dimension_semantics=("parallel", "arbitrary"),
            vmem_limit_bytes=vmem_limit),
    )(params8, pairpack, idxrows, idxicol, refc6ijT, covcn, atompackT,
      cnT, ncmaskT, ncwT, refqT, fixgwT, alpha0T, refc6iiT, expAT, expBT, reduceT)

    res = jnp.sum(atomout.reshape(S, 8, Np), axis=0)
    edisp = res[0, :N]
    pol = res[1, :N]
    c6c = res[2, :N]
    if not compute_atomic_quantities:
        pol = jnp.zeros_like(pol)
        c6c = jnp.zeros_like(c6c)
    return edisp, pol, c6c


# ---------------------- init-time buffer precompute (glue) ----------------------
def compute_refc6(bufs, scaleq):
    """Mirrors D4DispersionEnergy._compute_refc6 (runs once at init)."""
    is_ = bufs["refsys"]                                   # [Zmax, R] int
    iz = bufs["zeff"][is_]                                 # [Zmax, R]
    refh = bufs["refh"] * scaleq
    qref, qmod = iz, iz + refh
    qmod_ = jnp.where(qmod > 1e-8, qmod, 1.0)
    zeta_sec = jnp.where(
        qmod > 1e-8,
        jnp.exp(G_A * (1.0 - jnp.exp(bufs["gam"][is_] * G_C * (1.0 - qref / qmod_)))),
        math.exp(G_A))
    alpha = bufs["sscale"][is_][..., None] * bufs["secaiw"][is_] * zeta_sec[..., None]
    alpha = jnp.maximum(
        bufs["ascale"][..., None] * (bufs["alphaiw"] - bufs["hcount"][..., None] * alpha), 0.0)
    cpw = bufs["casimir_polder_weights"]                   # [F]
    return (3.0 / math.pi) * jnp.einsum("irf,jsf,f->ijrs", alpha, alpha, cpw)


# ---------------------- pure-JAX reference (faithful torch translation) ----------------------
def reference_forward(N, Z, qa, rij, idx_i, idx_j, bufs, refc6, params):
    s6, s8, a1, a2, scaleq = [params[i] for i in range(5)]
    rij = rij * CONVERT2BOHR
    Zi, Zj = Z[idx_i], Z[idx_j]
    rco = K2 * (bufs["rcov"][Zi] + bufs["rcov"][Zj])
    den = K4 * jnp.exp(-((jnp.abs(bufs["en"][Zi] - bufs["en"][Zj]) + K5) ** 2) / K6)
    tmp = den * 0.5 * (1.0 + jax_erf(-KN * (rij - rco) / rco))
    covcn = jnp.zeros(N, jnp.float32).at[idx_i].add(tmp)
    gweights = jnp.sum(bufs["ncount_mask"][Z] * jnp.exp(
        -WF * bufs["ncount_weight"][Z] * (covcn[:, None, None] - bufs["cn"][Z]) ** 2), -1)
    norm = jnp.sum(gweights, -1, keepdims=True)
    norm_ = jnp.where(norm > 1e-8, norm, 1.0)
    gweights = jnp.where(norm > 1e-8, gweights / norm_, bufs["fixgweights"][Z])
    iz = bufs["zeff"][Z][:, None]
    qref = iz + bufs["refq"][Z] * scaleq
    qmod = iz + qa[:, None]
    qmod_ = jnp.where(qmod > 1e-8, qmod, 1.0)
    zeta = jnp.where(
        qmod > 1e-8,
        jnp.exp(G_A * (1.0 - jnp.exp(bufs["gam"][Z][:, None] * G_C * (1.0 - qref / qmod_)))),
        math.exp(G_A)) * gweights
    zetai, zetaj = zeta[idx_i], zeta[idx_j]
    refc6ij = refc6[Zi, Zj]
    zetaij = zetai[:, :, None] * zetaj[:, None, :]
    c6ij = jnp.sum((refc6ij * zetaij).reshape(refc6ij.shape[0], -1), -1)
    sqrt_r4r2ij = SQRT3 * bufs["sqrt_r4r2"][Zi] * bufs["sqrt_r4r2"][Zj]
    r0 = a1 * sqrt_r4r2ij + a2
    oor6 = 1.0 / (rij ** 6 + r0 ** 6)
    oor8 = 1.0 / (rij ** 8 + r0 ** 8)
    pairwise = -c6ij * (s6 * oor6 + s8 * sqrt_r4r2ij ** 2 * oor8) * CONVERT2EV
    edisp = jnp.zeros(N, jnp.float32).at[idx_i].add(pairwise)
    pol = jnp.sum(zeta * bufs["alpha"][Z, :, 0], -1) * CONVERT2A3
    refc6ii = refc6[Z, Z]
    zetaii = zeta[:, :, None] * zeta[:, None, :]
    c6c = jnp.sum((refc6ii * zetaii).reshape(N, -1), -1) * CONVERT2EVA6
    return edisp, pol, c6c


# --------------------------------- main ---------------------------------
if __name__ == "__main__":
    Zmax, NREF, NCOUNT, NFREQ = 10, 7, 7, 23
    N_ATOMS, N_PAIRS = 8, 24

    key = jax.random.PRNGKey(0)
    ks = jax.random.split(key, 32)

    fg = jax.random.uniform(ks[15], (Zmax, NREF), minval=0.1, maxval=1.0)
    bufs = {
        "refsys": jax.random.randint(ks[0], (Zmax, NREF), 0, Zmax, dtype=jnp.int32),
        "zeff": jax.random.uniform(ks[1], (Zmax,), minval=1.0, maxval=10.0),
        "refh": jax.random.uniform(ks[2], (Zmax, NREF), minval=0.0, maxval=1.0),
        "sscale": jax.random.uniform(ks[3], (Zmax,), minval=0.5, maxval=1.5),
        "secaiw": jax.random.uniform(ks[4], (Zmax, NFREQ), minval=0.1, maxval=2.0),
        "gam": jax.random.uniform(ks[5], (Zmax,), minval=0.1, maxval=0.5),
        "ascale": jax.random.uniform(ks[6], (Zmax, NREF), minval=0.5, maxval=1.5),
        "alphaiw": jax.random.uniform(ks[7], (Zmax, NREF, NFREQ), minval=0.5, maxval=5.0),
        "hcount": jax.random.randint(ks[8], (Zmax, NREF), 0, 3).astype(jnp.float32),
        "casimir_polder_weights": jax.random.uniform(ks[9], (NFREQ,), minval=0.05, maxval=1.0),
        "rcov": jax.random.uniform(ks[10], (Zmax,), minval=0.6, maxval=2.4),
        "en": jax.random.uniform(ks[11], (Zmax,), minval=0.7, maxval=4.0),
        "ncount_mask": jax.random.bernoulli(ks[12], 0.7, (Zmax, NREF, NCOUNT)).astype(jnp.float32),
        "ncount_weight": jax.random.uniform(ks[13], (Zmax, NREF, NCOUNT), minval=0.5, maxval=2.0),
        "cn": jax.random.uniform(ks[14], (Zmax, NREF, NCOUNT), minval=0.0, maxval=4.0),
        "fixgweights": fg / jnp.sum(fg, axis=-1, keepdims=True),
        "refq": jax.random.uniform(ks[16], (Zmax, NREF), minval=-0.4, maxval=0.4),
        "sqrt_r4r2": jax.random.uniform(ks[17], (Zmax,), minval=1.0, maxval=3.0),
        "alpha": jax.random.uniform(ks[18], (Zmax, NREF, NFREQ), minval=0.5, maxval=5.0),
    }

    # trainable scalars stored as softplus_inverse, activated with softplus (as in the module)
    raw = jnp.array([softplus_inverse(1.0), softplus_inverse(1.61679827),
                     softplus_inverse(0.44959224), softplus_inverse(3.35743605),
                     softplus_inverse(1.0)], jnp.float32)
    params = jax.nn.softplus(raw)                     # [s6, s8, a1, a2, scaleq]

    refc6 = compute_refc6(bufs, params[4])            # [Zmax, Zmax, NREF, NREF]

    # example inputs
    Z = jax.random.randint(ks[20], (N_ATOMS,), 1, Zmax, dtype=jnp.int32)
    qa = jax.random.uniform(ks[21], (N_ATOMS,), minval=-0.3, maxval=0.3)
    idx_i = jax.random.randint(ks[22], (N_PAIRS,), 0, N_ATOMS, dtype=jnp.int32)
    off = jax.random.randint(ks[23], (N_PAIRS,), 1, N_ATOMS, dtype=jnp.int32)
    idx_j = (idx_i + off) % N_ATOMS
    rij = jax.random.uniform(ks[24], (N_PAIRS,), minval=1.8, maxval=4.5)   # Angstrom

    out = d4_dispersion_forward(N_ATOMS, Z, qa, rij, idx_i, idx_j,
                                bufs, refc6, params,
                                compute_atomic_quantities=True,
                                pair_tile=128, num_shards=2)
    edisp, pol, c6c = jax.block_until_ready(out)

    e_ref, p_ref, c_ref = reference_forward(N_ATOMS, Z, qa, rij, idx_i, idx_j,
                                            bufs, refc6, params)
    # bf16 refc6 stream, single-pass-bf16 one-hot gathers and approx reciprocals trade
    # ~1% accuracy for throughput -> validate at 3e-2 relative.
    np.testing.assert_allclose(np.asarray(edisp), np.asarray(e_ref), rtol=3e-2, atol=1e-3)
    np.testing.assert_allclose(np.asarray(pol), np.asarray(p_ref), rtol=3e-2, atol=1e-3)
    np.testing.assert_allclose(np.asarray(c6c), np.asarray(c_ref), rtol=3e-2, atol=1e-3)

    print("KERNEL_OK")
</pallas_src>

<mosaic_0001>
module attributes {stable_mosaic.version = 11 : i64} {
  func.func @covcn_kernel(%arg0: i32, %arg1: memref<8x128xf32, #tpu.memory_space<vmem>>, %arg2: memref<128x1xi32, #tpu.memory_space<vmem>>, %arg3: memref<1x128xf32, #tpu.memory_space<vmem>>) attributes {dimension_semantics = [#tpu.dimension_semantics<arbitrary>], iteration_bounds = array<i64: 2>, scalar_prefetch = 0 : i64, scratch_operands = 0 : i64, tpu.core_type = #tpu.core_type<tc>, window_params = [{transform_indices = @transform_0, window_bounds = array<i64: 8, 128>}, {transform_indices = @transform_1, window_bounds = array<i64: 128, 1>}, {pipeline_mode = #tpu.pipeline_mode<synchronous>, transform_indices = @transform_2, window_bounds = array<i64: 1, 128>}]} {
    %c0_i32 = arith.constant 0 : i32
    %0 = arith.cmpi eq, %arg0, %c0_i32 : i32
    %1 = arith.extui %0 : i1 to i32
    %c0_i32_0 = arith.constant 0 : i32
    %2 = arith.cmpi ne, %1, %c0_i32_0 : i32
    scf.if %2 {
      %cst_33 = arith.constant 0.000000e+00 : f32
      %77 = vector.broadcast %cst_33 : f32 to vector<1x128xf32>
      %c0_34 = arith.constant 0 : index
      %c0_35 = arith.constant 0 : index
      %78 = vector.load %arg3[%c0_34, %c0_35] : memref<1x128xf32, #tpu.memory_space<vmem>>, vector<1x128xf32>
      tpu.vector_store %arg3[%c0_34, %c0_35], %77 {strides = array<i32>} : memref<1x128xf32, #tpu.memory_space<vmem>>, vector<1x128xf32>,
    } else {
    }
    %c0 = arith.constant 0 : index
    %c0_1 = arith.constant 0 : index
    %3 = vector.load %arg1[%c0, %c0_1] : memref<8x128xf32, #tpu.memory_space<vmem>>, vector<1x128xf32>
    %cst = arith.constant 1.88972616 : f32
    %4 = vector.broadcast %cst : f32 to vector<1x128xf32>
    %5 = arith.mulf %3, %4 : vector<1x128xf32>
    %c1 = arith.constant 1 : index
    %c0_2 = arith.constant 0 : index
    %6 = vector.load %arg1[%c1, %c0_2] : memref<8x128xf32, #tpu.memory_space<vmem>>, vector<1x128xf32>
    %c2 = arith.constant 2 : index
    %c0_3 = arith.constant 0 : index
    %7 = vector.load %arg1[%c2, %c0_3] : memref<8x128xf32, #tpu.memory_space<vmem>>, vector<1x128xf32>
    %8 = arith.addf %6, %7 : vector<1x128xf32>
    %cst_4 = arith.constant 1.33333337 : f32
    %9 = vector.broadcast %cst_4 : f32 to vector<1x128xf32>
    %10 = arith.mulf %9, %8 : vector<1x128xf32>
    %c3 = arith.constant 3 : index
    %c0_5 = arith.constant 0 : index
    %11 = vector.load %arg1[%c3, %c0_5] : memref<8x128xf32, #tpu.memory_space<vmem>>, vector<1x128xf32>
    %c4 = arith.constant 4 : index
    %c0_6 = arith.constant 0 : index
    %12 = vector.load %arg1[%c4, %c0_6] : memref<8x128xf32, #tpu.memory_space<vmem>>, vector<1x128xf32>
    %13 = arith.subf %11, %12 : vector<1x128xf32>
    %14 = math.absf %13 : vector<1x128xf32>
    %cst_7 = arith.constant 19.0885696 : f32
    %15 = vector.broadcast %cst_7 : f32 to vector<1x128xf32>
    %16 = arith.addf %14, %15 : vector<1x128xf32>
    %17 = arith.mulf %16, %16 : vector<1x128xf32>
    %cst_8 = arith.constant 0.000000e+00 : f32
    %18 = vector.broadcast %cst_8 : f32 to vector<1x128xf32>
    %19 = arith.subf %18, %17 : vector<1x128xf32>
    %cst_9 = arith.constant 254.555313 : f32
    %20 = vector.broadcast %cst_9 : f32 to vector<1x128xf32>
    %21 = arith.divf %19, %20 : vector<1x128xf32>
    %22 = math.exp %21 : vector<1x128xf32>
    %cst_10 = arith.constant 4.104510e+00 : f32
    %23 = vector.broadcast %cst_10 : f32 to vector<1x128xf32>
    %24 = arith.mulf %23, %22 : vector<1x128xf32>
    %cst_11 = arith.constant 5.000000e-01 : f32
    %25 = vector.broadcast %cst_11 : f32 to vector<1x128xf32>
    %26 = arith.mulf %24, %25 : vector<1x128xf32>
    %27 = arith.subf %5, %10 : vector<1x128xf32>
    %cst_12 = arith.constant -7.500000e+00 : f32
    %28 = vector.broadcast %cst_12 : f32 to vector<1x128xf32>
    %29 = arith.mulf %28, %27 : vector<1x128xf32>
    %30 = arith.divf %29, %10 : vector<1x128xf32>
    %31 = math.absf %30 : vector<1x128xf32>
    %cst_13 = arith.constant 0.327591091 : f32
    %32 = vector.broadcast %cst_13 : f32 to vector<1x128xf32>
    %33 = arith.mulf %32, %31 : vector<1x128xf32>
    %cst_14 = arith.constant 1.000000e+00 : f32
    %34 = vector.broadcast %cst_14 : f32 to vector<1x128xf32>
    %35 = arith.addf %34, %33 : vector<1x128xf32>
    %cst_15 = arith.constant 1.000000e+00 : f32
    %36 = vector.broadcast %cst_15 : f32 to vector<1x128xf32>
    %37 = arith.divf %36, %35 : vector<1x128xf32>
    %cst_16 = arith.constant 1.06140542 : f32
    %38 = vector.broadcast %cst_16 : f32 to vector<1x128xf32>
    %39 = arith.mulf %37, %38 : vector<1x128xf32>
    %cst_17 = arith.constant -1.45315206 : f32
    %40 = vector.broadcast %cst_17 : f32 to vector<1x128xf32>
    %41 = arith.addf %40, %39 : vector<1x128xf32>
    %42 = arith.mulf %37, %41 : vector<1x128xf32>
    %cst_18 = arith.constant 1.42141378 : f32
    %43 = vector.broadcast %cst_18 : f32 to vector<1x128xf32>
    %44 = arith.addf %43, %42 : vector<1x128xf32>
    %45 = arith.mulf %37, %44 : vector<1x128xf32>
    %cst_19 = arith.constant -0.284496725 : f32
    %46 = vector.broadcast %cst_19 : f32 to vector<1x128xf32>
    %47 = arith.addf %46, %45 : vector<1x128xf32>
    %48 = arith.mulf %37, %47 : vector<1x128xf32>
    %cst_20 = arith.constant 0.254829586 : f32
    %49 = vector.broadcast %cst_20 : f32 to vector<1x128xf32>
    %50 = arith.addf %49, %48 : vector<1x128xf32>
    %51 = arith.mulf %37, %50 : vector<1x128xf32>
    %cst_21 = arith.constant 0.000000e+00 : f32
    %52 = vector.broadcast %cst_21 : f32 to vector<1x128xf32>
    %53 = arith.subf %52, %31 : vector<1x128xf32>
    %54 = arith.mulf %53, %31 : vector<1x128xf32>
    %55 = math.exp %54 : vector<1x128xf32>
    %56 = arith.mulf %51, %55 : vector<1x128xf32>
    %cst_22 = arith.constant 1.000000e+00 : f32
    %57 = vector.broadcast %cst_22 : f32 to vector<1x128xf32>
    %58 = arith.subf %57, %56 : vector<1x128xf32>
    %cst_23 = arith.constant 0.000000e+00 : f32
    %59 = vector.broadcast %cst_23 : f32 to vector<1x128xf32>
    %60 = arith.cmpf oge, %30, %59 : vector<1x128xf32>
    %cst_24 = arith.constant 0.000000e+00 : f32
    %61 = vector.broadcast %cst_24 : f32 to vector<1x128xf32>
    %62 = arith.subf %61, %58 : vector<1x128xf32>
    %63 = arith.select %60, %58, %62 : vector<1x128xi1>, vector<1x128xf32>
    %cst_25 = arith.constant 1.000000e+00 : f32
    %64 = vector.broadcast %cst_25 : f32 to vector<1x128xf32>
    %65 = arith.addf %64, %63 : vector<1x128xf32>
    %66 = arith.mulf %26, %65 : vector<1x128xf32>
    %67 = tpu.iota {dimensions = array<i32: 1>} : vector<128x128xi32>
    %c0_26 = arith.constant 0 : index
    %c0_27 = arith.constant 0 : index
    %68 = vector.load %arg2[%c0_26, %c0_27] : memref<128x1xi32, #tpu.memory_space<vmem>>, vector<128x1xi32>
    %69 = vector.broadcast %68 : vector<128x1xi32> to vector<128x128xi32>
    %70 = arith.cmpi eq, %67, %69 : vector<128x128xi32>
    %71 = arith.extui %70 : vector<128x128xi1> to vector<128x128xi32>
    %72 = arith.sitofp %71 : vector<128x128xi32> to vector<128x128xf32>
    %c0_28 = arith.constant 0 : index
    %c0_29 = arith.constant 0 : index
    %73 = vector.load %arg3[%c0_28, %c0_29] : memref<1x128xf32, #tpu.memory_space<vmem>>, vector<1x128xf32>
    %cst_30 = arith.constant dense<0.000000e+00> : vector<1x128xf32>
    %74 = tpu.matmul %66, %72, %cst_30 {dimension_numbers = #tpu.dot_dimension_numbers<[1], [0], [0], [1], [0, 0, 1, 1], [], []>, precision = #tpu.contract_precision<fp32>} : vector<1x128xf32>, vector<128x128xf32>, vector<1x128xf32> -> vector<1x128xf32>
    %75 = arith.addf %73, %74 : vector<1x128xf32>
    %c0_31 = arith.constant 0 : index
    %c0_32 = arith.constant 0 : index
    %76 = vector.load %arg3[%c0_31, %c0_32] : memref<1x128xf32, #tpu.memory_space<vmem>>, vector<1x128xf32>
    tpu.vector_store %arg3[%c0_31, %c0_32], %75 {strides = array<i32>} : memref<1x128xf32, #tpu.memory_space<vmem>>, vector<1x128xf32>,
    return
  }
  func.func @transform_0(%arg0: i32) -> (i32, i32) {
    %c0_i32 = arith.constant 0 : i32
    %c0_i32_0 = arith.constant 0 : i32
    return %c0_i32, %arg0 : i32, i32
  }
  func.func @transform_1(%arg0: i32) -> (i32, i32) {
    %c0_i32 = arith.constant 0 : i32
    %c0_i32_0 = arith.constant 0 : i32
    return %arg0, %c0_i32 : i32, i32
  }
  func.func @transform_2(%arg0: i32) -> (i32, i32) {
    %c0_i32 = arith.constant 0 : i32
    %c0_i32_0 = arith.constant 0 : i32
    %c0_i32_1 = arith.constant 0 : i32
    return %c0_i32, %c0_i32_0 : i32, i32
  }
}

</mosaic_0001>

<bundles_post_ra>
// kernel: tpu_custom_call.1
= control target key start
LH: loop header
LB: loop body
LE: loop exit
PB: predicated region body
PF: predicated region fallthrough
CT: control target
= control target key end

     0   :  { %7 = vsyncpa [#allocation3], 0  ;;  %s1493_s9 = smov 0   ;;  %s2142_s0 = inlined_call_operand.vmem [shape: f32[8,256], index: 0, kind: input, shape index: {}]   ;;  %s2143_s1 = inlined_call_operand.vmem [shape: s32[256,1], index: 1, kind: input, shape index: {}]   ;;  %s2144_s2 = inlined_call_operand.hbm [shape: f32[1,128], index: 2, kind: output, shape index: {}]  }
   0x1 LB: > { %s1499_s10 = sadd.s32 4294967295, %s1470_s9   ;;  %p1021_p0 = scmp.ge.s32.totalorder %s1470_s9, 1  ;;  %s1470_s9 = sphi %s1493_s9, %s13_s9  }
   0x2   : > { %p118_p1 = scmp.lt.s32.totalorder %s1470_s9, 3 }
   0x4   : > { %p119_p2 = pnand %p1021_p0, %p118_p1 }
   0x5   : > { %p139_p3 = scmp.lt.s32.totalorder (!%p119_p2), %s1499_s10, 1  ;;  %s1023_s11 = sshll.u32 (!%p119_p2), %s1499_s10, 4 }
   0x6   : > { %122 = sbr.rel (%p119_p2) target bundleno = 458 (0x1ca), region = 28  ;;  %p144_p4 = scmp.lt.s32.totalorder (!%p119_p2), %s1023_s11, 31 }
   0x7   : > { %p1025_p5 = scmp.ne.s32.totalorder (!%p119_p2), %s1499_s10, 0 }
   0xb   : > { %s140_s12 = scalar_select %p139_p3, %s1499_s10, 1 }
   0xc   : > { %s2151_s11 = smov (!%p144_p4, %s1023_s11), 31  ;;  %152 = sbr.rel (%p1025_p5) target bundleno = 19 (0x13), region = 32 }
   0xd   : > { %s1022_s13 = sshll.u32 %s140_s12, 3  ;;  %s1024_s17 = sshll.u32 %s2151_s11, 3 }
   0xe   : > { %s1509_s16 = scalar_lea.vmem %s2142_s0, %s1022_s13  ;;  %s1514_s20 = scalar_lea.vmem %s2143_s1, %s1024_s17 }
  0x11   : > { %v1472_v0 = vmov 0.0  }
  0x12   : > { %153 = vst [vmem:[#allocation2] sm:$0x1] %v1472_v0 }
  0x13 PF: > { %v219_v1 = vld [vmem:[%s1514_s20 + $0x78] sm:$0xff]  ;;  %v217_v2 = vld [vmem:[%s1514_s20 + $0x68] sm:$0xff]  ;;  %v1473_v3 = vmov 0   ;;  %v218_v4 = vld [vmem:[%s1514_s20 + $0x70] sm:$0xff]  ;;  %v1474_v6 = vmov 0.0   ;;  %vm1475_vm0 = vmmov 0   ;;  %v202_v55 = vlaneseq }
  0x14   : > { %1427 = vset.pattern.permute.xlu1 %v1473_v3  ;;  %1426 = vset.pattern.permute.xlu0 %v1473_v3  ;;  %v216_v5 = vld [vmem:[%s1514_s20 + $0x60] sm:$0xff]  ;;  %v215_v7 = vld [vmem:[%s1514_s20 + $0x58] sm:$0xff]  ;;  %v214_v8 = vld [vmem:[%s1514_s20 + $0x50] sm:$0xff]  ;;  %s1477_s21 = smov [#allocation2]   ;;  %p1410_p6 = scmp.eq.s32.totalorder %s1499_s10, 1 }
  0x15   : > { %266 = vperm.xlu0 %1426, %v219_v1   ;;  %260 = vperm.xlu1 %1427, %v217_v2   ;;  %v213_v9 = vld [vmem:[%s1514_s20 + $0x48] sm:$0xff]  ;;  %v212_v10 = vld [vmem:[%s1514_s20 + $0x40] sm:$0xff]  ;;  %v211_v11 = vld [vmem:[%s1514_s20 + $0x38] sm:$0xff]  ;;  %v1544_v57 = vand.u32 127, %v202_v55  ;;  %v1476_v1 = vmov 1.0   ;;  %s967_s22 = sshll.u32 %s1477_s21, 4  ;;  %s968_s22 = int_to_ptr.vmem [resolvable:$true] %s967_s22 }
  0x16   : > { %1196 = vmatprep.subr.mxu0 %v1474_v6  ;;  %1231 = vmatprep.subr.mxu1 %v1474_v6  ;;  %v210_v12 = vld [vmem:[%s1514_s20 + $0x30] sm:$0xff]  ;;  %v209_v13 = vld [vmem:[%s1514_s20 + $0x28] sm:$0xff]  ;;  %v208_v14 = vld [vmem:[%s1514_s20 + $0x20] sm:$0xff]  ;;  %s1436_s23 = scalar_lea.vmem %s968_s22, 16  ;;  %s1442_s24 = scalar_lea.vmem %s968_s22, 32 }
  0x17   : > { %v207_v15 = vld [vmem:[%s1514_s20 + $0x18] sm:$0xff]  ;;  %v206_v16 = vld [vmem:[%s1514_s20 + $0x10] sm:$0xff]  ;;  %v156_v17 = vld [vmem:[%s1509_s16 + $0x1] sm:$0x1]  ;;  %1228 = vmatprep.mubr.msk.f32.mxu0 %vm1475_vm0, %v1474_v6  ;;  %1263 = vmatprep.mubr.msk.f32.mxu1 %vm1475_vm0, %v1474_v6  ;;  %p1437_p7 = scmp.ne.s32.totalorder %s968_s22, %s1436_s23  ;;  %p1443_p10 = scmp.lt.s32.totalorder %s968_s22, %s968_s22 }
  0x18   : > { %v157_v18 = vld [vmem:[%s1509_s16 + $0x2] sm:$0x1]  ;;  %v205_v20 = vld [vmem:[%s1514_s20 + $0x8] sm:$0xff]  ;;  %v154_v23 = vld [vmem:[%s1509_s16] sm:$0x1]  ;;  %p1444_p11 = scmp.lt.s32.totalorder %s1442_s24, %s1436_s23 }
  0x19   : > { %263 = vperm.xlu0 %1426, %v218_v4   ;;  %257 = vperm.xlu1 %1427, %v216_v5   ;;  %v158_v19 = vadd.f32 %v157_v18, %v156_v17  ;;  %v204_v21 = vld [vmem:[%s1514_s20] sm:$0xff]  ;;  %v155_v24 = vmul.f32 1.8897262, %v154_v23  ;;  %p1438_p8 = pnand %p1437_p7, %p1410_p6 }
  0x1a   : > { %v160_v33 = vld [vmem:[%s1509_s16 + $0x3] sm:$0x1]  ;;  %v161_v34 = vld [vmem:[%s1509_s16 + $0x4] sm:$0x1]  ;;  %p1445_p12 = por %p1444_p11, %p1443_p10 }
  0x1b   : > { %v159_v22 = vmul.f32 1.3333334, %v158_v19  ;;  %v162_v36 = vsub.f32 %v160_v33, %v161_v34  ;;  %p1439_p9 = pneg %p1438_p8 }
  0x1d   : > { %254 = vperm.xlu0 %1426, %v215_v7   ;;  %251 = vperm.xlu1 %1427, %v214_v8   ;;  %1428 = vrcp.f32 %v159_v22  ;;  %v173_v25 = vsub.f32 %v155_v24, %v159_v22  ;;  %v163_v38 = vand.u32 2147483647, %v162_v36  ;;  %p1446_p13 = pnand %p1445_p12, %p1439_p9 }
  0x1f   : > { %v174_v26 = vmul.f32 -7.5, %v173_v25  ;;  %v164_v41 = vadd.f32 19.08857, %v163_v38 }
  0x21   : > { %248 = vperm.xlu0 %1426, %v213_v9   ;;  %245 = vperm.xlu1 %1427, %v212_v10   ;;  %v165_v44 = vmul.f32 %v164_v41, %v164_v41 }
  0x23   : > { %v166_v47 = vsub.f32 0.0, %v165_v44 }
  0x25   : > { %242 = vperm.xlu0 %1426, %v211_v11   ;;  %239 = vperm.xlu1 %1427, %v210_v12   ;;  %v168_v49 = vmul.f32 0.003928419, %v166_v47 }
  0x27   : > { %v169_v51 = vmul.f32 1.442695, %v168_v49 }
  0x29   : > { %236 = vperm.xlu0 %1426, %v209_v13   ;;  %233 = vperm.xlu1 %1427, %v208_v14  }
  0x2a   : > { %v1429_v27 = vpop.eup %1428 }
  0x2b   : > { %v176_v28 = vmul.f32 %v1429_v27, %v174_v26 }
  0x2d   : > { %230 = vperm.xlu0 %1426, %v207_v15   ;;  %227 = vperm.xlu1 %1427, %v206_v16   ;;  %v177_v29 = vand.u32 2147483647, %v176_v28  ;;  %vm197_vm3 = vcmp.ge.f32.partialorder %v176_v28, 0.0 }
  0x2f   : > { %v178_v30 = vmul.f32 0.3275911, %v177_v29  ;;  %v191_v40 = vsub.f32 0.0, %v177_v29 }
  0x31   : > { %224 = vperm.xlu0 %1426, %v205_v20   ;;  %221 = vperm.xlu1 %1427, %v204_v21   ;;  %v179_v31 = vadd.f32 1.0, %v178_v30  ;;  %v192_v43 = vmul.f32 %v191_v40, %v177_v29 }
  0x33   : > { %1430 = vrcp.f32 %v179_v31  ;;  %v193_v46 = vmul.f32 1.442695, %v192_v43 }
  0x35   : > { %1432 = vpow2.f32 %v193_v46 }
  0x36   : > { %1434 = vpow2.f32 %v169_v51 }
  0x40   : > { %v1431_v32 = vpop.eup %1430 }
  0x41   : > { %v182_v35 = vmul.f32 1.0614054, %v1431_v32 }
  0x42   : > { %v1433_v54 = vpop.eup %1432 }
  0x43   : > { %v183_v37 = vadd.f32 -1.4531521, %v182_v35  ;;  %v1435_v61 = vpop.eup %1434 }
  0x44   : > { %v171_v7 = vmul.f32 4.10451, %v1435_v61 }
  0x45   : > { %v184_v39 = vmul.f32 %v1431_v32, %v183_v37 }
  0x46   : > { %v172_v18 = vmul.f32 0.5, %v171_v7 }
  0x47   : > { %v185_v42 = vadd.f32 1.4214138, %v184_v39 }
  0x49   : > { %v186_v45 = vmul.f32 %v1431_v32, %v185_v42 }
  0x4b   : > { %v187_v48 = vadd.f32 -0.28449672, %v186_v45 }
  0x4d   : > { %v188_v50 = vmul.f32 %v1431_v32, %v187_v48 }
  0x4f   : > { %v189_v52 = vadd.f32 0.2548296, %v188_v50 }
  0x51   : > { %v190_v53 = vmul.f32 %v1431_v32, %v189_v52 }
  0x53   : > { %v195_v56 = vmul.f32 %v1433_v54, %v190_v53 }
  0x55   : > { %v196_v58 = vsub.f32 1.0, %v195_v56 }
  0x57   : > { %v198_v62 = vsub.f32 0.0, %v196_v58 }
  0x59   : > { %v199_v9 = vsel %vm197_vm3, %v196_v58, %v198_v62 }
  0x5a   : > { %v200_v19 = vadd.f32 1.0, %v199_v9 }
  0x5c   : > { %v201_v32 = vmul.f32 %v200_v19, %v172_v18 }
  0x5e   : > { %v1690_v45 = vand.u32 4294901760, %v201_v32 }
  0x60   : > { %v1730_v61 = vsub.f32 %v201_v32, %v1690_v45 }
  0x90   : > { %v1546_v59 = vpop.permute.xlu0 %266  ;;  %v1548_v60 = vpop.permute.xlu1 %260 }
  0x91   : > { %vm283_vm1 = vcmp.eq.s32.totalorder %v1544_v57, %v1546_v59  ;;  %vm281_vm2 = vcmp.eq.s32.totalorder %v1544_v57, %v1548_v60 }
  0x92   : > { %v1041_v63 = vsel %vm283_vm1, 1.0, %v1474_v6  ;;  %v1039_v0 = vsel %vm281_vm2, 1.0, %v1474_v6  ;;  %1197 = vmatpush3.msk.msra.mxu0 %vm283_vm1, %v1476_v1 }
  0x93   : > { %v1566_v2 = vsub.f32 %v1041_v63, %v1041_v63  ;;  %v1568_v3 = vsub.f32 %v1039_v0, %v1039_v0  ;;  %1198 = vmatprep.subr.mxu0 %v1474_v6 }
  0x94   : > { %v1571_v4 = vpop.permute.xlu0 %263  ;;  %v1573_v5 = vpop.permute.xlu1 %257 }
  0x95   : > { %vm282_vm4 = vcmp.eq.s32.totalorder %v1544_v57, %v1571_v4  ;;  %vm280_vm5 = vcmp.eq.s32.totalorder %v1544_v57, %v1573_v5  ;;  %v411_v8 = vand.u32 4294901760, %v1566_v2  ;;  %v425_v12 = vand.u32 4294901760, %v1568_v3 }
  0x96   : > { %v1040_v10 = vsel %vm282_vm4, 1.0, %v1474_v6  ;;  %v1038_v11 = vsel %vm280_vm5, 1.0, %v1474_v6  ;;  %1199 = vmatpush3.msk.msra.mxu0 %vm282_vm4, %v1476_v1 }
  0x97   : > { %v1593_v13 = vsub.f32 %v1040_v10, %v1040_v10  ;;  %v1595_v14 = vsub.f32 %v1038_v11, %v1038_v11  ;;  %1200 = vmatprep.subr.mxu0 %v1474_v6  ;;  %v412_v15 = vsub.f32 %v1566_v2, %v411_v8  ;;  %v426_v24 = vsub.f32 %v1568_v3, %v425_v12 }
  0x98   : > { %v1601_v16 = vpop.permute.xlu0 %254  ;;  %v1603_v17 = vpop.permute.xlu1 %251  ;;  %1201 = vmatpush3.msk.msra.mxu0 %vm281_vm2, %v1476_v1 }
  0x99   : > { %vm279_vm6 = vcmp.eq.s32.totalorder %v1544_v57, %v1601_v16  ;;  %vm278_vm7 = vcmp.eq.s32.totalorder %v1544_v57, %v1603_v17  ;;  %1202 = vmatprep.subr.mxu0 %v1474_v6  ;;  %v413_v20 = vand.u32 4294901760, %v412_v15  ;;  %v418_v21 = vand.u32 4294901760, %v1593_v13 }
  0x9a   : > { %v1037_v22 = vsel %vm279_vm6, 1.0, %v1474_v6  ;;  %v1036_v23 = vsel %vm278_vm7, 1.0, %v1474_v6  ;;  %1203 = vmatpush3.msk.msra.mxu0 %vm280_vm5, %v1476_v1  ;;  %v432_v25 = vand.u32 4294901760, %v1595_v14  ;;  %v427_v40 = vand.u32 4294901760, %v426_v24 }
  0x9b   : > { %v1631_v26 = vsub.f32 %v1037_v22, %v1037_v22  ;;  %v1633_v27 = vsub.f32 %v1036_v23, %v1036_v23  ;;  %1204 = vmatprep.subr.mxu0 %v1474_v6  ;;  %1232 = vmatpush3.msra.mxu1 %v413_v20  ;;  %v419_v28 = vsub.f32 %v1593_v13, %v418_v21  ;;  %v400_v23 = vand.u32 4294901760, %v1730_v61 }
  0x9c   : > { %v1639_v29 = vpop.permute.xlu0 %248  ;;  %v1641_v30 = vpop.permute.xlu1 %245  ;;  %1205 = vmatpush3.msk.msra.mxu0 %vm279_vm6, %v1476_v1  ;;  %1233 = vmatprep.subr.mxu1 %v1474_v6  ;;  %v433_v31 = vsub.f32 %v1595_v14, %v432_v25 }
  0x9d   : > { %vm277_vm8 = vcmp.eq.s32.totalorder %v1544_v57, %v1639_v29  ;;  %vm276_vm9 = vcmp.eq.s32.totalorder %v1544_v57, %v1641_v30  ;;  %1206 = vmatprep.subr.mxu0 %v1474_v6  ;;  %v420_v33 = vand.u32 4294901760, %v419_v28  ;;  %v439_v34 = vand.u32 4294901760, %v1631_v26 }
  0x9e   : > { %v1035_v35 = vsel %vm277_vm8, 1.0, %v1474_v6  ;;  %v1034_v36 = vsel %vm276_vm9, 1.0, %v1474_v6  ;;  %1207 = vmatpush3.msk.msra.mxu0 %vm278_vm7, %v1476_v1  ;;  %v446_v37 = vand.u32 4294901760, %v1633_v27  ;;  %v434_v46 = vand.u32 4294901760, %v433_v31 }
  0x9f   : > { %v1670_v38 = vsub.f32 %v1035_v35, %v1035_v35  ;;  %v1672_v39 = vsub.f32 %v1034_v36, %v1034_v36  ;;  %1208 = vmatprep.subr.mxu0 %v1474_v6  ;;  %1234 = vmatpush3.msra.mxu1 %v420_v33  ;;  %v440_v41 = vsub.f32 %v1631_v26, %v439_v34 }
  0xa0   : > { %v1678_v42 = vpop.permute.xlu0 %242  ;;  %v1680_v43 = vpop.permute.xlu1 %239  ;;  %1209 = vmatpush3.msk.msra.mxu0 %vm277_vm8, %v1476_v1  ;;  %1235 = vmatprep.subr.mxu1 %v1474_v6  ;;  %v447_v44 = vsub.f32 %v1633_v27, %v446_v37 }
  0xa1   : > { %vm275_vm10 = vcmp.eq.s32.totalorder %v1544_v57, %v1678_v42  ;;  %vm2146_vm11 = vcmp.eq.s32.totalorder %v1544_v57, %v1680_v43  ;;  %1210 = vmatprep.subr.mxu0 %v1474_v6  ;;  %1236 = vmatpush3.msra.mxu1 %v427_v40  ;;  %v453_v47 = vand.u32 4294901760, %v1670_v38  ;;  %v460_v50 = vand.u32 4294901760, %v1672_v39 }
  0xa2   : > { %v1033_v48 = vsel %vm275_vm10, 1.0, %v1474_v6  ;;  %v1032_v49 = vsel %vm2146_vm11, 1.0, %v1474_v6  ;;  %1211 = vmatpush3.msk.msra.mxu0 %vm276_vm9, %v1476_v1  ;;  %1237 = vmatprep.subr.mxu1 %v1474_v6  ;;  %v441_v53 = vand.u32 4294901760, %v440_v41  ;;  %v448_v58 = vand.u32 4294901760, %v447_v44 }
  0xa3   : > { %v1712_v51 = vsub.f32 %v1033_v48, %v1033_v48  ;;  %v1714_v52 = vsub.f32 %v1032_v49, %v1032_v49  ;;  %1212 = vmatprep.subr.mxu0 %v1474_v6  ;;  %1238 = vmatpush3.msra.mxu1 %v434_v46  ;;  %v454_v54 = vsub.f32 %v1670_v38, %v453_v47 }
  0xa4   : > { %v1720_v55 = vpop.permute.xlu0 %236  ;;  %v1722_v56 = vpop.permute.xlu1 %233  ;;  %1213 = vmatpush3.msk.msra.mxu0 %vm275_vm10, %v1476_v1  ;;  %1239 = vmatprep.subr.mxu1 %v1474_v6  ;;  %v461_v62 = vsub.f32 %v1672_v39, %v460_v50  ;;  %v401_v49 = vsub.f32 %v1730_v61, %v400_v23 }
  0xa5   : > { %vm273_vm12 = vcmp.eq.s32.totalorder %v1544_v57, %v1720_v55  ;;  %vm2145_vm13 = vcmp.eq.s32.totalorder %v1544_v57, %v1722_v56  ;;  %1214 = vmatprep.subr.mxu0 %v1474_v6  ;;  %1240 = vmatpush3.msra.mxu1 %v441_v53  ;;  %v467_v63 = vand.u32 4294901760, %v1712_v51  ;;  %v474_v9 = vand.u32 4294901760, %v1714_v52 }
  0xa6   : > { %v1031_v0 = vsel %vm273_vm12, 1.0, %v1474_v6  ;;  %v1030_v7 = vsel %vm2145_vm13, 1.0, %v1474_v6  ;;  %1215 = vmatpush3.msk.msra.mxu0 %vm2146_vm11, %v1476_v1  ;;  %1241 = vmatprep.subr.mxu1 %v1474_v6  ;;  %v455_v15 = vand.u32 4294901760, %v454_v54  ;;  %v462_v24 = vand.u32 4294901760, %v461_v62 }
  0xa7   : > { %v1755_v10 = vsub.f32 %v1031_v0, %v1031_v0  ;;  %v1757_v11 = vsub.f32 %v1030_v7, %v1030_v7  ;;  %1216 = vmatprep.subr.mxu0 %v1474_v6  ;;  %1242 = vmatpush3.msra.mxu1 %v448_v58  ;;  %v468_v18 = vsub.f32 %v1712_v51, %v467_v63 }
  0xa8   : > { %v1763_v19 = vpop.permute.xlu0 %230  ;;  %v1765_v20 = vpop.permute.xlu1 %227  ;;  %1217 = vmatpush3.msk.msra.mxu0 %vm273_vm12, %v1476_v1  ;;  %1243 = vmatprep.subr.mxu1 %v1474_v6  ;;  %v475_v22 = vsub.f32 %v1714_v52, %v474_v9 }
  0xa9   : > { %vm271_vm14 = vcmp.eq.s32.totalorder %v1544_v57, %v1763_v19  ;;  %vm270_vm15 = vcmp.eq.s32.totalorder %v1544_v57, %v1765_v20  ;;  %1218 = vmatprep.subr.mxu0 %v1474_v6  ;;  %1244 = vmatpush3.msra.mxu1 %v455_v15  ;;  %v481_v28 = vand.u32 4294901760, %v1755_v10  ;;  %v488_v33 = vand.u32 4294901760, %v1757_v11 }
  0xaa   : > { %v1029_v31 = vsel %vm271_vm14, 1.0, %v1474_v6  ;;  %v1028_v32 = vsel %vm270_vm15, 1.0, %v1474_v6  ;;  %1219 = vmatpush3.msk.msra.mxu0 %vm2145_vm13, %v1476_v1  ;;  %1245 = vmatprep.subr.mxu1 %v1474_v6  ;;  %v469_v40 = vand.u32 4294901760, %v468_v18  ;;  %v476_v48 = vand.u32 4294901760, %v475_v22 }
  0xab   : > { %v1796_v35 = vsub.f32 %v1029_v31, %v1029_v31  ;;  %v1798_v36 = vsub.f32 %v1028_v32, %v1028_v32  ;;  %1220 = vmatprep.subr.mxu0 %v1474_v6  ;;  %1246 = vmatpush3.msra.mxu1 %v462_v24  ;;  %v482_v41 = vsub.f32 %v1755_v10, %v481_v28  ;;  %v402_v24 = vand.u32 4294901760, %v401_v49 }
  0xac   : > { %v1804_v44 = vpop.permute.xlu0 %224  ;;  %v1806_v46 = vpop.permute.xlu1 %221  ;;  %1221 = vmatpush3.msk.msra.mxu0 %vm271_vm14, %v1476_v1  ;;  %1247 = vmatprep.subr.mxu1 %v1474_v6  ;;  %v489_v53 = vsub.f32 %v1757_v11, %v488_v33 }
  0xad   : > { %vm269_vm3 = vcmp.eq.s32.totalorder %v1544_v57, %v1804_v44  ;;  %vm268_vm13 = vcmp.eq.s32.totalorder %v1544_v57, %v1806_v46  ;;  %1222 = vmatprep.subr.mxu0 %v1474_v6  ;;  %1248 = vmatpush3.msra.mxu1 %v469_v40  ;;  %v495_v54 = vand.u32 4294901760, %v1796_v35  ;;  %v502_v0 = vand.u32 4294901760, %v1798_v36 }
  0xae   : > { %v1027_v58 = vsel %vm269_vm3, 1.0, %v1474_v6  ;;  %v1026_v62 = vsel %vm268_vm13, 1.0, %v1474_v6  ;;  %1223 = vmatpush3.msk.msra.mxu0 %vm270_vm15, %v1476_v1  ;;  %1249 = vmatprep.subr.mxu1 %v1474_v6  ;;  %v483_v18 = vand.u32 4294901760, %v482_v41  ;;  %v490_v31 = vand.u32 4294901760, %v489_v53 }
  0xaf   : > { %v1839_v7 = vsub.f32 %v1027_v58, %v1027_v58  ;;  %v1841_v15 = vsub.f32 %v1026_v62, %v1026_v62  ;;  %1224 = vmatprep.subr.mxu0 %v1474_v6  ;;  %1250 = vmatpush3.msra.mxu1 %v476_v48  ;;  %v496_v22 = vsub.f32 %v1796_v35, %v495_v54 }
  0xb0   : > { %1225 = vmatpush3.msk.msra.mxu0 %vm269_vm3, %v1476_v1  ;;  %1251 = vmatprep.subr.mxu1 %v1474_v6  ;;  %v503_v32 = vsub.f32 %v1798_v36, %v502_v0 }
  0xb1   : > { %1226 = vmatprep.subr.mxu0 %v1474_v6  ;;  %1252 = vmatpush3.msra.mxu1 %v483_v18  ;;  %v509_v40 = vand.u32 4294901760, %v1839_v7  ;;  %v516_v41 = vand.u32 4294901760, %v1841_v15  ;;  %v497_v48 = vand.u32 4294901760, %v496_v22 }
  0xb2   : > { %1227 = vmatpush3.msk.msra.mxu0 %vm268_vm13, %v1476_v1  ;;  %1253 = vmatprep.subr.mxu1 %v1474_v6  ;;  %v504_v53 = vand.u32 4294901760, %v503_v32 }
  0xb3   : > { %1254 = vmatpush3.msra.mxu1 %v490_v31  ;;  %1266 = vmatprep.subr.mxu0 %v1474_v6  ;;  %v510_v49 = vsub.f32 %v1839_v7, %v509_v40  ;;  %v517_v58 = vsub.f32 %v1841_v15, %v516_v41 }
  0xb4   : > { %1229 = vmatmul.mubr.f32.vlgmr.msra.gmra.mxu0 %v402_v24  ;;  %1255 = vmatprep.subr.mxu1 %v1474_v6 }
  0xb5   : > { %1267 = vmatpush3.msra.mxu0 %v1566_v2  ;;  %1256 = vmatpush3.msra.mxu1 %v497_v48  ;;  %v511_v62 = vand.u32 4294901760, %v510_v49  ;;  %v518_v18 = vand.u32 4294901760, %v517_v58 }
  0xb6   : > { %1268 = vmatprep.subr.mxu0 %v1474_v6  ;;  %1257 = vmatprep.subr.mxu1 %v1474_v6 }
  0xb7   : > { %1269 = vmatpush3.msra.mxu0 %v1593_v13  ;;  %1258 = vmatpush3.msra.mxu1 %v504_v53 }
  0xb8   : > { %1270 = vmatprep.subr.mxu0 %v1474_v6  ;;  %1259 = vmatprep.subr.mxu1 %v1474_v6 }
  0xb9   : > { %1271 = vmatpush3.msra.mxu0 %v1568_v3  ;;  %1260 = vmatpush3.msra.mxu1 %v511_v62 }
  0xba   : > { %1272 = vmatprep.subr.mxu0 %v1474_v6  ;;  %1261 = vmatprep.subr.mxu1 %v1474_v6 }
  0xbb   : > { %1273 = vmatpush3.msra.mxu0 %v1595_v14  ;;  %1262 = vmatpush3.msra.mxu1 %v518_v18 }
  0xbc   : > { %1274 = vmatprep.subr.mxu0 %v1474_v6  ;;  %1264 = vmatmul.mubr.f32.vlgmr.msra.gmra.mxu1 %v1690_v45 }
  0xbd   : > { %1275 = vmatpush3.msra.mxu0 %v1631_v26  ;;  %1301 = vmatprep.subr.mxu1 %v1474_v6 }
  0xbe   : > { %1276 = vmatprep.subr.mxu0 %v1474_v6  ;;  %1302 = vmatpush3.msk.msra.mxu1 %vm283_vm1, %v1476_v1 }
  0xbf   : > { %1277 = vmatpush3.msra.mxu0 %v1633_v27  ;;  %1303 = vmatprep.subr.mxu1 %v1474_v6 }
  0xc0   : > { %1278 = vmatprep.subr.mxu0 %v1474_v6  ;;  %1304 = vmatpush3.msk.msra.mxu1 %vm282_vm4, %v1476_v1 }
  0xc1   : > { %1279 = vmatpush3.msra.mxu0 %v1670_v38  ;;  %1305 = vmatprep.subr.mxu1 %v1474_v6 }
  0xc2   : > { %1280 = vmatprep.subr.mxu0 %v1474_v6  ;;  %1306 = vmatpush3.msk.msra.mxu1 %vm281_vm2, %v1476_v1 }
  0xc3   : > { %1281 = vmatpush3.msra.mxu0 %v1672_v39  ;;  %1307 = vmatprep.subr.mxu1 %v1474_v6 }
  0xc4   : > { %1282 = vmatprep.subr.mxu0 %v1474_v6  ;;  %1308 = vmatpush3.msk.msra.mxu1 %vm280_vm5, %v1476_v1 }
  0xc5   : > { %1283 = vmatpush3.msra.mxu0 %v1712_v51  ;;  %1309 = vmatprep.subr.mxu1 %v1474_v6 }
  0xc6   : > { %1284 = vmatprep.subr.mxu0 %v1474_v6  ;;  %1310 = vmatpush3.msk.msra.mxu1 %vm279_vm6, %v1476_v1 }
  0xc7   : > { %1285 = vmatpush3.msra.mxu0 %v1714_v52  ;;  %1311 = vmatprep.subr.mxu1 %v1474_v6 }
  0xc8   : > { %1286 = vmatprep.subr.mxu0 %v1474_v6  ;;  %1312 = vmatpush3.msk.msra.mxu1 %vm278_vm7, %v1476_v1 }
  0xc9   : > { %1287 = vmatpush3.msra.mxu0 %v1755_v10  ;;  %1313 = vmatprep.subr.mxu1 %v1474_v6 }
  0xca   : > { %1288 = vmatprep.subr.mxu0 %v1474_v6  ;;  %1314 = vmatpush3.msk.msra.mxu1 %vm277_vm8, %v1476_v1 }
  0xcb   : > { %1289 = vmatpush3.msra.mxu0 %v1757_v11  ;;  %1315 = vmatprep.subr.mxu1 %v1474_v6 }
  0xcc   : > { %1290 = vmatprep.subr.mxu0 %v1474_v6  ;;  %1316 = vmatpush3.msk.msra.mxu1 %vm276_vm9, %v1476_v1 }
  0xcd   : > { %1291 = vmatpush3.msra.mxu0 %v1796_v35  ;;  %1317 = vmatprep.subr.mxu1 %v1474_v6 }
  0xce   : > { %1292 = vmatprep.subr.mxu0 %v1474_v6  ;;  %1318 = vmatpush3.msk.msra.mxu1 %vm275_vm10, %v1476_v1 }
  0xcf   : > { %1293 = vmatpush3.msra.mxu0 %v1798_v36  ;;  %1319 = vmatprep.subr.mxu1 %v1474_v6 }
  0xd0   : > { %1294 = vmatprep.subr.mxu0 %v1474_v6  ;;  %1320 = vmatpush3.msk.msra.mxu1 %vm2146_vm11, %v1476_v1  ;;  %vm2147_vm11 = vcmp.eq.s32.totalorder %v1544_v57, %v1722_v56 }
  0xd1   : > { %1295 = vmatpush3.msra.mxu0 %v1839_v7  ;;  %1321 = vmatprep.subr.mxu1 %v1474_v6 }
  0xd2   : > { %1296 = vmatprep.subr.mxu0 %v1474_v6  ;;  %1322 = vmatpush3.msk.msra.mxu1 %vm273_vm12, %v1476_v1 }
  0xd3   : > { %1297 = vmatpush3.msra.mxu0 %v1841_v15  ;;  %1298 = vmatprep.mubr.msk.f32.mxu0 %vm1475_vm0, %v1474_v6 }
  0xd4   : > { %1323 = vmatprep.subr.mxu1 %v1474_v6  ;;  %1299 = vmatmul.mubr.f32.vlgmr.msra.gmra.mxu0 %v1730_v61 }
  0xd5   : > { %1324 = vmatpush3.msk.msra.mxu1 %vm2147_vm11, %v1476_v1  ;;  %1336 = vmatprep.subr.mxu0 %v1474_v6 }
  0xd6   : > { %1325 = vmatprep.subr.mxu1 %v1474_v6  ;;  %1337 = vmatpush3.msra.mxu0 %v411_v8 }
  0xd7   : > { %1326 = vmatpush3.msk.msra.mxu1 %vm271_vm14, %v1476_v1  ;;  %1338 = vmatprep.subr.mxu0 %v1474_v6 }
  0xd8   : > { %1327 = vmatprep.subr.mxu1 %v1474_v6  ;;  %1339 = vmatpush3.msra.mxu0 %v418_v21 }
  0xd9   : > { %1328 = vmatpush3.msk.msra.mxu1 %vm270_vm15, %v1476_v1  ;;  %1340 = vmatprep.subr.mxu0 %v1474_v6 }
  0xda   : > { %1329 = vmatprep.subr.mxu1 %v1474_v6  ;;  %1341 = vmatpush3.msra.mxu0 %v425_v12 }
  0xdb   : > { %1330 = vmatpush3.msk.msra.mxu1 %vm269_vm3, %v1476_v1  ;;  %1342 = vmatprep.subr.mxu0 %v1474_v6 }
  0xdc   : > { %1331 = vmatprep.subr.mxu1 %v1474_v6  ;;  %1343 = vmatpush3.msra.mxu0 %v432_v25 }
  0xdd   : > { %1332 = vmatpush3.msk.msra.mxu1 %vm268_vm13, %v1476_v1  ;;  %1333 = vmatprep.mubr.msk.f32.mxu1 %vm1475_vm0, %v1474_v6 }
  0xde   : > { %1344 = vmatprep.subr.mxu0 %v1474_v6  ;;  %1334 = vmatmul.mubr.f32.vlgmr.msra.gmra.mxu1 %v400_v23 }
  0xdf   : > { %1345 = vmatpush3.msra.mxu0 %v439_v34  ;;  %1371 = vmatprep.subr.mxu1 %v1474_v6 }
  0xe0   : > { %1346 = vmatprep.subr.mxu0 %v1474_v6  ;;  %1372 = vmatpush3.msk.msra.mxu1 %vm283_vm1, %v1476_v1  ;;  %vm2148_vm1 = vcmp.eq.s32.totalorder %v1544_v57, %v1680_v43  ;;  %v316_v57 = vld [vmem:[#allocation2] sm:$0x1] }
  0xe1   : > { %1347 = vmatpush3.msra.mxu0 %v446_v37  ;;  %1373 = vmatprep.subr.mxu1 %v1474_v6 }
  0xe2   : > { %1348 = vmatprep.subr.mxu0 %v1474_v6  ;;  %1374 = vmatpush3.msk.msra.mxu1 %vm282_vm4, %v1476_v1 }
  0xe3   : > { %1349 = vmatpush3.msra.mxu0 %v453_v47  ;;  %1375 = vmatprep.subr.mxu1 %v1474_v6 }
  0xe4   : > { %1350 = vmatprep.subr.mxu0 %v1474_v6  ;;  %1376 = vmatpush3.msk.msra.mxu1 %vm281_vm2, %v1476_v1  ;;  %vm2149_vm2 = vmmov %vm2147_vm11 }
  0xe5   : > { %1351 = vmatpush3.msra.mxu0 %v460_v50  ;;  %1377 = vmatprep.subr.mxu1 %v1474_v6 }
  0xe6   : > { %1352 = vmatprep.subr.mxu0 %v1474_v6  ;;  %1378 = vmatpush3.msk.msra.mxu1 %vm280_vm5, %v1476_v1 }
  0xe7   : > { %1353 = vmatpush3.msra.mxu0 %v467_v63  ;;  %1379 = vmatprep.subr.mxu1 %v1474_v6 }
  0xe8   : > { %1354 = vmatprep.subr.mxu0 %v1474_v6  ;;  %1380 = vmatpush3.msk.msra.mxu1 %vm279_vm6, %v1476_v1 }
  0xe9   : > { %1355 = vmatpush3.msra.mxu0 %v474_v9  ;;  %1381 = vmatprep.subr.mxu1 %v1474_v6 }
  0xea   : > { %1356 = vmatprep.subr.mxu0 %v1474_v6  ;;  %1382 = vmatpush3.msk.msra.mxu1 %vm278_vm7, %v1476_v1 }
  0xeb   : > { %1357 = vmatpush3.msra.mxu0 %v481_v28  ;;  %1383 = vmatprep.subr.mxu1 %v1474_v6 }
  0xec   : > { %1358 = vmatprep.subr.mxu0 %v1474_v6  ;;  %1384 = vmatpush3.msk.msra.mxu1 %vm277_vm8, %v1476_v1 }
  0xed   : > { %1359 = vmatpush3.msra.mxu0 %v488_v33  ;;  %1385 = vmatprep.subr.mxu1 %v1474_v6 }
  0xee   : > { %1360 = vmatprep.subr.mxu0 %v1474_v6  ;;  %1386 = vmatpush3.msk.msra.mxu1 %vm276_vm9, %v1476_v1 }
  0xef   : > { %1361 = vmatpush3.msra.mxu0 %v495_v54  ;;  %1387 = vmatprep.subr.mxu1 %v1474_v6 }
  0xf0   : > { %1362 = vmatprep.subr.mxu0 %v1474_v6  ;;  %1388 = vmatpush3.msk.msra.mxu1 %vm275_vm10, %v1476_v1 }
  0xf1   : > { %1363 = vmatpush3.msra.mxu0 %v502_v0  ;;  %1389 = vmatprep.subr.mxu1 %v1474_v6 }
  0xf2   : > { %1364 = vmatprep.subr.mxu0 %v1474_v6  ;;  %1390 = vmatpush3.msk.msra.mxu1 %vm2148_vm1, %v1476_v1 }
  0xf3   : > { %1365 = vmatpush3.msra.mxu0 %v509_v40  ;;  %1391 = vmatprep.subr.mxu1 %v1474_v6 }
  0xf4   : > { %1366 = vmatprep.subr.mxu0 %v1474_v6  ;;  %1392 = vmatpush3.msk.msra.mxu1 %vm273_vm12, %v1476_v1 }
  0xf5   : > { %1367 = vmatpush3.msra.mxu0 %v516_v41  ;;  %1368 = vmatprep.mubr.msk.f32.mxu0 %vm1475_vm0, %v1474_v6 }
  0xf6   : > { %1393 = vmatprep.subr.mxu1 %v1474_v6  ;;  %1369 = vmatmul.mubr.f32.vlgmr.msra.gmra.mxu0 %v1690_v45 }
  0xf7   : > { %1394 = vmatpush3.msk.msra.mxu1 %vm2149_vm2, %v1476_v1  ;;  %1403 = vmatprep.mubr.msk.f32.mxu1 %vm1475_vm0, %v1474_v6 }
  0xf8   : > { %1395 = vmatprep.subr.mxu1 %v1474_v6 }
  0xf9   : > { %1396 = vmatpush3.msk.msra.mxu1 %vm271_vm14, %v1476_v1 }
  0xfa   : > { %1397 = vmatprep.subr.mxu1 %v1474_v6 }
  0xfb   : > { %1398 = vmatpush3.msk.msra.mxu1 %vm270_vm15, %v1476_v1 }
  0xfc   : > { %1399 = vmatprep.subr.mxu1 %v1474_v6 }
  0xfd   : > { %1400 = vmatpush3.msk.msra.mxu1 %vm269_vm3, %v1476_v1 }
  0xfe   : > { %1401 = vmatprep.subr.mxu1 %v1474_v6 }
  0xff   : > { %1402 = vmatpush3.msk.msra.mxu1 %vm268_vm13, %v1476_v1 }
 0x100   : > { %1404 = vmatmul.mubr.f32.vlgmr.msra.gmra.mxu1 %v1690_v45 }
 0x174   : > { %v404_v59 = vpop.f32.mrf.mxu0 }
 0x176   : > { %v1230_v60 = vpop.f32.mrf.mxu0 }
 0x17c   : > { %v555_v2 = vpop.f32.mrf.mxu1 }
 0x17d   : > { %v556_v16 = vadd.f32 %v555_v2, %v404_v59 }
 0x17e   : > { %v1265_v3 = vpop.f32.mrf.mxu1 }
 0x194   : > { %v659_v4 = vpop.f32.mrf.mxu0 }
 0x195   : > { %v660_v6 = vadd.f32 %v659_v4, %v556_v16 }
 0x196   : > { %v1300_v5 = vpop.f32.mrf.mxu0 }
 0x19e   : > { %v748_v8 = vpop.f32.mrf.mxu1 }
 0x19f   : > { %v749_v17 = vadd.f32 %v748_v8, %v660_v6 }
 0x1a0   : > { %v1335_v12 = vpop.f32.mrf.mxu1 }
 0x1b6   : > { %v867_v13 = vpop.f32.mrf.mxu0 }
 0x1b7   : > { %v868_v21 = vadd.f32 %v867_v13, %v749_v17 }
 0x1b8   : > { %v1370_v14 = vpop.f32.mrf.mxu0 }
 0x1c0   : > { %v954_v1 = vpop.f32.mrf.mxu1 }
 0x1c1   : > { %v955_v25 = vadd.f32 %v954_v1, %v868_v21 }
 0x1c2   : > { %v1405_v26 = vpop.f32.mrf.mxu1 }
 0x1c3   : > { %v958_v27 = vadd.f32 %v955_v25, %v316_v57 }
 0x1c5   : > { %959 = vst [vmem:[#allocation2] sm:$0x1] %v958_v27 }
 0x1c6   : > { %1449 = shalt.err (!%p1446_p13)
}
 0x1c7   : > { %1407 = dma.vmem_to_hbm [thread:$0]  (%p1410_p6), %s968_s22, 16, %s2144_s2, [#allocation3]  }
 0x1c8   : > { %1465 = dma.done.wait (%p1410_p6), [#allocation3], 16  }
 0x1c9   : > { %1467 = vsyncadd (%p1410_p6), [#allocation3], 4294967280 }
 0x1ca PF: > { %s13_s9 = sadd.s32 1, %s1470_s9  }
 0x1cb   : > { %p10_p0 = scmp.ge.s32.totalorder %s13_s9, 4  }
 0x1cd   :  { %12 = sbr.rel (!%p10_p0) target bundleno = 1 (0x1), region = 62 }
 0x1d2   :  { %980 = vsyncpa [#allocation3], 1 }
 0x1d3   :  { %982 = vsyncpa [#allocation3 + $0x1], 1 }

</bundles_post_ra>
